<compile_context>
chip_gen: v6e
topology: v6e:2x2x1
jax: 0.10.0
libtpu: 0.0.40
codegen_flags: <defaults>
</compile_context>

<pallas_src>
import functools

import jax
import jax.numpy as jnp
from jax import lax
from jax.experimental import pallas as pl
from jax.experimental.pallas import tpu as pltpu

_LANES = 128
_NEG_BIG = -1e30          # finite "-inf": exp() underflows to 0 and 0 * _NEG_BIG stays 0 (no NaN)
_TINY = 1.1754944e-38     # smallest normal f32: log(_TINY) finite, so t*log(max(t,_TINY)) == xlogy(t,t)


def _round_up(x, m):
    return ((x + m - 1) // m) * m


def _kl_div_kernel(N, C, tile_n, tile_c,
                   pred_ref, tgt_ref, out_ref,
                   m_ref, s_ref, acc_ref, tsum_ref):
    """Grid = (batch tiles, class tiles); class axis streams an online LSE.

    Lane-parallel accumulators: lane l of the (tile_n, 128) scratch owns every
    class whose within-tile column index is congruent to l (mod 128), so the
    per-step updates are pure elementwise VPU/EUP work; the only cross-lane
    (XLU) traffic is the once-per-batch-tile merge in the epilogue.
    """
    i = pl.program_id(0)
    j = pl.program_id(1)

    @pl.when(j == 0)
    def _():
        m_ref[...] = jnp.full_like(m_ref, _NEG_BIG)    # running per-lane max of p
        s_ref[...] = jnp.zeros_like(s_ref)             # running per-lane sum exp(p - m)
        acc_ref[...] = jnp.zeros_like(acc_ref)         # per-lane sum [xlogy(t,t) - t*p]
        tsum_ref[...] = jnp.zeros_like(tsum_ref)       # per-lane sum t

    p = pred_ref[...].astype(jnp.float32)              # (tile_n, tile_c)
    t = tgt_ref[...].astype(jnp.float32)

    # Ragged-edge masking — only compiled in when the shapes actually need it.
    need_row_mask = (N % tile_n) != 0
    need_col_mask = (C % tile_c) != 0
    if need_row_mask or need_col_mask:
        valid = None
        if need_row_mask:
            rows = i * tile_n + lax.broadcasted_iota(jnp.int32, (tile_n, tile_c), 0)
            valid = rows < N
        if need_col_mask:
            cols = j * tile_c + lax.broadcasted_iota(jnp.int32, (tile_n, tile_c), 1)
            cmask = cols < C
            valid = cmask if valid is None else (valid & cmask)
        p = jnp.where(valid, p, _NEG_BIG)   # exp -> 0; keeps OOB rows/cols NaN-free
        t = jnp.where(valid, t, 0.0)        # zero contribution everywhere OOB

    num_chunks = tile_c // _LANES           # tile_c is always a multiple of 128

    # --- lane-parallel online max over this class tile (pure elementwise) ---
    m_old = m_ref[...]
    m_new = m_old
    for k in range(num_chunks):
        m_new = jnp.maximum(m_new, p[:, k * _LANES:(k + 1) * _LANES])

    # --- single rescale, then elementwise accumulation over 128-lane chunks ---
    s_new = s_ref[...] * jnp.exp(m_old - m_new)
    a_new = acc_ref[...]
    ts_new = tsum_ref[...]
    for k in range(num_chunks):
        pc = p[:, k * _LANES:(k + 1) * _LANES]
        tc = t[:, k * _LANES:(k + 1) * _LANES]
        s_new = s_new + jnp.exp(pc - m_new)
        # xlogy(t, t) - t * p   (t == 0 contributes exactly 0)
        a_new = a_new + tc * (jnp.log(jnp.maximum(tc, _TINY)) - pc)
        ts_new = ts_new + tc
    m_ref[...] = m_new
    s_ref[...] = s_new
    acc_ref[...] = a_new
    tsum_ref[...] = ts_new

    # Epilogue: one cross-lane merge + cross-row collapse per batch tile,
    # emitted as a lane-dense partial block.  Final sum + /N in the wrapper.
    @pl.when(j == pl.num_programs(1) - 1)
    def _():
        m = m_ref[...]
        m_row = jnp.max(m, axis=1, keepdims=True)                               # (tile_n, 1)
        s_row = jnp.sum(s_ref[...] * jnp.exp(m - m_row), axis=1, keepdims=True)
        lse = m_row + jnp.log(s_row)
        kl_rows = (jnp.sum(acc_ref[...], axis=1, keepdims=True)
                   + lse * jnp.sum(tsum_ref[...], axis=1, keepdims=True))
        out_ref[...] = jnp.full(out_ref.shape, jnp.sum(kl_rows), dtype=out_ref.dtype)


def _choose_tiles(N, C, itemsize, target_block_bytes):
    """Pick (tile_n, tile_c).

    tile_c: multiple of 128, balanced so column overshoot is < 128 lanes even
    for awkward C (e.g. C=2304 -> 2 tiles of 1152 instead of padding to 4096).
    tile_n: ~target_block_bytes per input block, sublane-aligned, capped so the
    batch ("parallel") axis has >= 2 tiles when N permits (feeds both v7x
    TensorCores; negligible cost on single-TC generations).
    """
    MAX_TILE_C = 2048
    c128 = _round_up(C, _LANES)
    if c128 <= MAX_TILE_C:
        tile_c = c128
    else:
        n_c = -(-C // MAX_TILE_C)
        tile_c = _round_up(-(-C // n_c), _LANES)

    sub = 8 if itemsize >= 4 else (16 if itemsize == 2 else 32)
    n_ceil = _round_up(N, sub)

    tile_n = max(1, target_block_bytes // (tile_c * itemsize))
    tile_n = max(sub, (tile_n // sub) * sub)
    tile_n = min(tile_n, 4096)              # keeps the 4x (tile_n,128) f32 scratch <= 8 MiB
    tile_n = min(tile_n, n_ceil)
    if n_ceil >= 2 * sub:                   # >= 2 batch tiles when N permits (v7x megacore)
        tile_n = min(tile_n, _round_up(-(-n_ceil // 2), sub))
    return int(tile_n), int(tile_c)


def kl_div_loss(pred, target, *,
                target_block_bytes=4 * 1024 * 1024,
                vmem_limit_bytes=48 * 1024 * 1024):
    """Equivalent of KLDivLoss(reduction='batchmean', log_target=False) applied
    to (log_softmax(pred, axis=1), target).  pred/target: (N, C) float arrays
    (f32 or bf16 — the kernel computes in f32 internally)."""
    assert pred.ndim == 2 and pred.shape == target.shape
    N, C = pred.shape
    itemsize = max(jnp.dtype(pred.dtype).itemsize, jnp.dtype(target.dtype).itemsize)
    tile_n, tile_c = _choose_tiles(N, C, itemsize, target_block_bytes)

    n_tiles_n = -(-N // tile_n)
    n_tiles_c = -(-C // tile_c)

    kernel = functools.partial(_kl_div_kernel, N, C, tile_n, tile_c)

    partials = pl.pallas_call(
        kernel,
        out_shape=jax.ShapeDtypeStruct((n_tiles_n, 8, _LANES), jnp.float32),
        grid_spec=pltpu.PrefetchScalarGridSpec(
            num_scalar_prefetch=0,
            grid=(n_tiles_n, n_tiles_c),
            in_specs=[
                pl.BlockSpec((tile_n, tile_c), lambda i, j: (i, j)),
                pl.BlockSpec((tile_n, tile_c), lambda i, j: (i, j)),
            ],
            out_specs=pl.BlockSpec((1, 8, _LANES), lambda i, j: (i, 0, 0)),
            scratch_shapes=[
                pltpu.VMEM((tile_n, _LANES), jnp.float32),   # running max
                pltpu.VMEM((tile_n, _LANES), jnp.float32),   # running sum(exp)
                pltpu.VMEM((tile_n, _LANES), jnp.float32),   # sum xlogy(t,t) - t*p
                pltpu.VMEM((tile_n, _LANES), jnp.float32),   # sum t
            ],
        ),
        compiler_params=pltpu.CompilerParams(
            dimension_semantics=("parallel", "arbitrary"),
            vmem_limit_bytes=vmem_limit_bytes,
        ),
        cost_estimate=pl.CostEstimate(
            flops=8 * N * C,
            transcendentals=N * C,
            bytes_accessed=2 * N * C * itemsize + n_tiles_n * 8 * _LANES * 4,
        ),
    )(pred, target)

    # Final cross-tile reduction + batchmean normalization (uses the TRUE N).
    return (jnp.sum(partials[:, 0, 0]) / N).astype(jnp.float32)


def _reference(pred, target):
    p = pred.astype(jnp.float32)
    t = target.astype(jnp.float32)
    logp = jax.nn.log_softmax(p, axis=1)
    pointwise = jnp.where(t > 0, t * (jnp.log(jnp.where(t > 0, t, 1.0)) - logp), 0.0)
    return jnp.sum(pointwise) / pred.shape[0]


if __name__ == "__main__":
    key = jax.random.PRNGKey(0)

    tests = [
        # (N, C, dtype, target_block_bytes)
        (8, 32, jnp.float32, 4 * 1024 * 1024),      # tiny: single tile, ragged C (<128 lanes masked)
        (64, 2304, jnp.float32, 16 * 1024),         # balanced class tiles (2 x 1152), streaming LSE
        (50, 96, jnp.float32, 4 * 1024),            # ragged rows + ragged cols, many batch tiles
        (64, 256, jnp.bfloat16, 4 * 1024 * 1024),   # aligned fast path, bf16 inputs, 2 batch tiles
    ]
    for idx, (N, C, dt, blk) in enumerate(tests):
        k1, k2 = jax.random.split(jax.random.fold_in(key, idx))
        pred = jax.random.normal(k1, (N, C), dtype=jnp.float32).astype(dt)         # raw logits
        target = jax.nn.softmax(jax.random.normal(k2, (N, C)), axis=1).astype(dt)  # probabilities

        out = jax.block_until_ready(kl_div_loss(pred, target, target_block_bytes=blk))
        ref = _reference(pred, target)
        assert jnp.allclose(out, ref, rtol=2e-4, atol=1e-5), (N, C, str(dt), out, ref)

    print("KERNEL_OK")
</pallas_src>

<mosaic_0001>
module attributes {stable_mosaic.version = 11 : i64} {
  func.func @_kl_div_kernel(%arg0: i32, %arg1: i32, %arg2: memref<8x128xf32, #tpu.memory_space<vmem>>, %arg3: memref<8x128xf32, #tpu.memory_space<vmem>>, %arg4: memref<1x8x128xf32, #tpu.memory_space<vmem>>, %arg5: memref<8x128xf32, #tpu.memory_space<vmem>>, %arg6: memref<8x128xf32, #tpu.memory_space<vmem>>, %arg7: memref<8x128xf32, #tpu.memory_space<vmem>>, %arg8: memref<8x128xf32, #tpu.memory_space<vmem>>) attributes {dimension_semantics = [#tpu.dimension_semantics<parallel>, #tpu.dimension_semantics<arbitrary>], iteration_bounds = array<i64: 1, 1>, scalar_prefetch = 0 : i64, scratch_operands = 4 : i64, tpu.core_type = #tpu.core_type<tc>, window_params = [{transform_indices = @transform_0, window_bounds = array<i64: 8, 128>}, {transform_indices = @transform_1, window_bounds = array<i64: 8, 128>}, {transform_indices = @transform_2, window_bounds = array<i64: 1, 8, 128>}]} {
    %c0_i32 = arith.constant 0 : i32
    %0 = arith.cmpi eq, %arg1, %c0_i32 : i32
    %1 = arith.extui %0 : i1 to i32
    %c0_i32_0 = arith.constant 0 : i32
    %2 = arith.cmpi ne, %1, %c0_i32_0 : i32
    scf.if %2 {
      %cst_24 = arith.constant -1.000000e+30 : f32
      %40 = vector.broadcast %cst_24 : f32 to vector<8x128xf32>
      %c0_25 = arith.constant 0 : index
      %c0_26 = arith.constant 0 : index
      %41 = vector.load %arg5[%c0_25, %c0_26] : memref<8x128xf32, #tpu.memory_space<vmem>>, vector<8x128xf32>
      tpu.vector_store %arg5[%c0_25, %c0_26], %40 {strides = array<i32>} : memref<8x128xf32, #tpu.memory_space<vmem>>, vector<8x128xf32>,
      %cst_27 = arith.constant 0.000000e+00 : f32
      %42 = vector.broadcast %cst_27 : f32 to vector<8x128xf32>
      %c0_28 = arith.constant 0 : index
      %c0_29 = arith.constant 0 : index
      %43 = vector.load %arg6[%c0_28, %c0_29] : memref<8x128xf32, #tpu.memory_space<vmem>>, vector<8x128xf32>
      tpu.vector_store %arg6[%c0_28, %c0_29], %42 {strides = array<i32>} : memref<8x128xf32, #tpu.memory_space<vmem>>, vector<8x128xf32>,
      %cst_30 = arith.constant 0.000000e+00 : f32
      %44 = vector.broadcast %cst_30 : f32 to vector<8x128xf32>
      %c0_31 = arith.constant 0 : index
      %c0_32 = arith.constant 0 : index
      %45 = vector.load %arg7[%c0_31, %c0_32] : memref<8x128xf32, #tpu.memory_space<vmem>>, vector<8x128xf32>
      tpu.vector_store %arg7[%c0_31, %c0_32], %44 {strides = array<i32>} : memref<8x128xf32, #tpu.memory_space<vmem>>, vector<8x128xf32>,
      %cst_33 = arith.constant 0.000000e+00 : f32
      %46 = vector.broadcast %cst_33 : f32 to vector<8x128xf32>
      %c0_34 = arith.constant 0 : index
      %c0_35 = arith.constant 0 : index
      %47 = vector.load %arg8[%c0_34, %c0_35] : memref<8x128xf32, #tpu.memory_space<vmem>>, vector<8x128xf32>
      tpu.vector_store %arg8[%c0_34, %c0_35], %46 {strides = array<i32>} : memref<8x128xf32, #tpu.memory_space<vmem>>, vector<8x128xf32>,
    } else {
    }
    %c0 = arith.constant 0 : index
    %c0_1 = arith.constant 0 : index
    %3 = vector.load %arg2[%c0, %c0_1] : memref<8x128xf32, #tpu.memory_space<vmem>>, vector<8x128xf32>
    %c0_2 = arith.constant 0 : index
    %c0_3 = arith.constant 0 : index
    %4 = vector.load %arg3[%c0_2, %c0_3] : memref<8x128xf32, #tpu.memory_space<vmem>>, vector<8x128xf32>
    %c128_i32 = arith.constant 128 : i32
    %5 = arith.muli %arg1, %c128_i32 : i32
    %6 = tpu.iota {dimensions = array<i32: 1>} : vector<8x128xi32>
    %7 = vector.broadcast %5 : i32 to vector<8x128xi32>
    %8 = arith.addi %7, %6 : vector<8x128xi32>
    %c32_i32 = arith.constant 32 : i32
    %9 = vector.broadcast %c32_i32 : i32 to vector<8x128xi32>
    %10 = arith.cmpi slt, %8, %9 : vector<8x128xi32>
    %cst = arith.constant -1.000000e+30 : f32
    %11 = vector.broadcast %cst : f32 to vector<8x128xf32>
    %12 = arith.select %10, %3, %11 : vector<8x128xi1>, vector<8x128xf32>
    %cst_4 = arith.constant 0.000000e+00 : f32
    %13 = vector.broadcast %cst_4 : f32 to vector<8x128xf32>
    %14 = arith.select %10, %4, %13 : vector<8x128xi1>, vector<8x128xf32>
    %c0_5 = arith.constant 0 : index
    %c0_6 = arith.constant 0 : index
    %15 = vector.load %arg5[%c0_5, %c0_6] : memref<8x128xf32, #tpu.memory_space<vmem>>, vector<8x128xf32>
    %16 = arith.maximumf %15, %12 : vector<8x128xf32>
    %c0_7 = arith.constant 0 : index
    %c0_8 = arith.constant 0 : index
    %17 = vector.load %arg6[%c0_7, %c0_8] : memref<8x128xf32, #tpu.memory_space<vmem>>, vector<8x128xf32>
    %18 = arith.subf %15, %16 : vector<8x128xf32>
    %19 = math.exp %18 : vector<8x128xf32>
    %20 = arith.mulf %17, %19 : vector<8x128xf32>
    %c0_9 = arith.constant 0 : index
    %c0_10 = arith.constant 0 : index
    %21 = vector.load %arg7[%c0_9, %c0_10] : memref<8x128xf32, #tpu.memory_space<vmem>>, vector<8x128xf32>
    %c0_11 = arith.constant 0 : index
    %c0_12 = arith.constant 0 : index
    %22 = vector.load %arg8[%c0_11, %c0_12] : memref<8x128xf32, #tpu.memory_space<vmem>>, vector<8x128xf32>
    %23 = arith.subf %12, %16 : vector<8x128xf32>
    %24 = math.exp %23 : vector<8x128xf32>
    %25 = arith.addf %20, %24 : vector<8x128xf32>
    %cst_13 = arith.constant 1.17549435E-38 : f32
    %26 = vector.broadcast %cst_13 : f32 to vector<8x128xf32>
    %27 = arith.maximumf %14, %26 : vector<8x128xf32>
    %28 = math.log %27 : vector<8x128xf32>
    %29 = arith.subf %28, %12 : vector<8x128xf32>
    %30 = arith.mulf %14, %29 : vector<8x128xf32>
    %31 = arith.addf %21, %30 : vector<8x128xf32>
    %32 = arith.addf %22, %14 : vector<8x128xf32>
    %c0_14 = arith.constant 0 : index
    %c0_15 = arith.constant 0 : index
    %33 = vector.load %arg5[%c0_14, %c0_15] : memref<8x128xf32, #tpu.memory_space<vmem>>, vector<8x128xf32>
    tpu.vector_store %arg5[%c0_14, %c0_15], %16 {strides = array<i32>} : memref<8x128xf32, #tpu.memory_space<vmem>>, vector<8x128xf32>,
    %c0_16 = arith.constant 0 : index
    %c0_17 = arith.constant 0 : index
    %34 = vector.load %arg6[%c0_16, %c0_17] : memref<8x128xf32, #tpu.memory_space<vmem>>, vector<8x128xf32>
    tpu.vector_store %arg6[%c0_16, %c0_17], %25 {strides = array<i32>} : memref<8x128xf32, #tpu.memory_space<vmem>>, vector<8x128xf32>,
    %c0_18 = arith.constant 0 : index
    %c0_19 = arith.constant 0 : index
    %35 = vector.load %arg7[%c0_18, %c0_19] : memref<8x128xf32, #tpu.memory_space<vmem>>, vector<8x128xf32>
    tpu.vector_store %arg7[%c0_18, %c0_19], %31 {strides = array<i32>} : memref<8x128xf32, #tpu.memory_space<vmem>>, vector<8x128xf32>,
    %c0_20 = arith.constant 0 : index
    %c0_21 = arith.constant 0 : index
    %36 = vector.load %arg8[%c0_20, %c0_21] : memref<8x128xf32, #tpu.memory_space<vmem>>, vector<8x128xf32>
    tpu.vector_store %arg8[%c0_20, %c0_21], %32 {strides = array<i32>} : memref<8x128xf32, #tpu.memory_space<vmem>>, vector<8x128xf32>,
    %c0_i32_22 = arith.constant 0 : i32
    %37 = arith.cmpi eq, %arg1, %c0_i32_22 : i32
    %38 = arith.extui %37 : i1 to i32
    %c0_i32_23 = arith.constant 0 : i32
    %39 = arith.cmpi ne, %38, %c0_i32_23 : i32
    scf.if %39 {
      %c0_24 = arith.constant 0 : index
      %c0_25 = arith.constant 0 : index
      %40 = vector.load %arg5[%c0_24, %c0_25] : memref<8x128xf32, #tpu.memory_space<vmem>>, vector<8x128xf32>
      %cst_26 = arith.constant dense<0xFF800000> : vector<8xf32>
      %41 = vector.multi_reduction <maximumf>, %40, %cst_26 [1] : vector<8x128xf32> to vector<8xf32>
      %42 = vector.shape_cast %41 : vector<8xf32> to vector<8x1xf32>
      %c0_27 = arith.constant 0 : index
      %c0_28 = arith.constant 0 : index
      %43 = vector.load %arg6[%c0_27, %c0_28] : memref<8x128xf32, #tpu.memory_space<vmem>>, vector<8x128xf32>
      %44 = vector.broadcast %42 : vector<8x1xf32> to vector<8x128xf32>
      %45 = arith.subf %40, %44 : vector<8x128xf32>
      %46 = math.exp %45 : vector<8x128xf32>
      %47 = arith.mulf %43, %46 : vector<8x128xf32>
      %cst_29 = arith.constant dense<0.000000e+00> : vector<8xf32>
      %48 = vector.multi_reduction <add>, %47, %cst_29 [1] : vector<8x128xf32> to vector<8xf32>
      %49 = vector.shape_cast %48 : vector<8xf32> to vector<8x1xf32>
      %50 = math.log %49 : vector<8x1xf32>
      %51 = arith.addf %42, %50 : vector<8x1xf32>
      %c0_30 = arith.constant 0 : index
      %c0_31 = arith.constant 0 : index
      %52 = vector.load %arg7[%c0_30, %c0_31] : memref<8x128xf32, #tpu.memory_space<vmem>>, vector<8x128xf32>
      %cst_32 = arith.constant dense<0.000000e+00> : vector<8xf32>
      %53 = vector.multi_reduction <add>, %52, %cst_32 [1] : vector<8x128xf32> to vector<8xf32>
      %54 = vector.shape_cast %53 : vector<8xf32> to vector<8x1xf32>
      %c0_33 = arith.constant 0 : index
      %c0_34 = arith.constant 0 : index
      %55 = vector.load %arg8[%c0_33, %c0_34] : memref<8x128xf32, #tpu.memory_space<vmem>>, vector<8x128xf32>
      %cst_35 = arith.constant dense<0.000000e+00> : vector<8xf32>
      %56 = vector.multi_reduction <add>, %55, %cst_35 [1] : vector<8x128xf32> to vector<8xf32>
      %57 = vector.shape_cast %56 : vector<8xf32> to vector<8x1xf32>
      %58 = arith.mulf %51, %57 : vector<8x1xf32>
      %59 = arith.addf %54, %58 : vector<8x1xf32>
      %60 = vector.shape_cast %59 : vector<8x1xf32> to vector<1x8x1xf32>
      %cst_36 = arith.constant dense<0.000000e+00> : vector<1xf32>
      %61 = vector.multi_reduction <add>, %60, %cst_36 [1, 2] : vector<1x8x1xf32> to vector<1xf32>
      %62 = vector.shape_cast %61 : vector<1xf32> to vector<1x1x1xf32>
      %63 = vector.extract %62[0, 0, 0] : f32 from vector<1x1x1xf32>
      %64 = vector.broadcast %63 : f32 to vector<1x8x128xf32>
      %c0_37 = arith.constant 0 : index
      %c0_38 = arith.constant 0 : index
      %c0_39 = arith.constant 0 : index
      %65 = vector.load %arg4[%c0_37, %c0_38, %c0_39] : memref<1x8x128xf32, #tpu.memory_space<vmem>>, vector<1x8x128xf32>
      tpu.vector_store %arg4[%c0_37, %c0_38, %c0_39], %64 {strides = array<i32>} : memref<1x8x128xf32, #tpu.memory_space<vmem>>, vector<1x8x128xf32>,
    } else {
    }
    return
  }
  func.func @transform_0(%arg0: i32, %arg1: i32) -> (i32, i32) {
    %c0_i32 = arith.constant 0 : i32
    return %arg0, %arg1 : i32, i32
  }
  func.func @transform_1(%arg0: i32, %arg1: i32) -> (i32, i32) {
    %c0_i32 = arith.constant 0 : i32
    return %arg0, %arg1 : i32, i32
  }
  func.func @transform_2(%arg0: i32, %arg1: i32) -> (i32, i32, i32) {
    %c0_i32 = arith.constant 0 : i32
    %c0_i32_0 = arith.constant 0 : i32
    %c0_i32_1 = arith.constant 0 : i32
    return %arg0, %c0_i32, %c0_i32_0 : i32, i32, i32
  }
}

</mosaic_0001>

<bundles_post_ra>
// kernel: tpu_custom_call.1
= control target key start
LH: loop header
LB: loop body
LE: loop exit
PB: predicated region body
PF: predicated region fallthrough
CT: control target
= control target key end

     0   :  { %7 = vsyncpa [#allocation7], 0  ;;  %s239_s0 = inlined_call_operand.hbm [shape: f32[8,32], index: 0, kind: input, shape index: {}]   ;;  %s240_s1 = inlined_call_operand.hbm [shape: f32[8,32], index: 1, kind: input, shape index: {}]   ;;  %s241_s2 = inlined_call_operand.hbm [shape: f32[1,8,128], index: 2, kind: output, shape index: {}]  }
   0x1   :  { %8 = vsyncpa [#allocation10], 0 }
   0x2   :  { %9 = vsyncpa [#allocation8], 0  ;;  %s212_s9 = smov [#allocation6]   ;;  %s213_s11 = smov [#allocation9]  }
   0x3   :  { %s16_s10 = sshll.u32 %s212_s9, 4  ;;  %s26_s12 = sshll.u32 %s213_s11, 4  ;;  %s17_s10 = int_to_ptr.vmem [resolvable:$true] %s16_s10  ;;  %s27_s12 = int_to_ptr.vmem [resolvable:$true] %s26_s12 }
   0x4   :  { %s154_s13 = scalar_lea.vmem %s17_s10, 128  ;;  %p159_p1 = scmp.lt.s32.totalorder %s17_s10, %s17_s10 }
   0x5   :  { %p155_p0 = scmp.ne.s32.totalorder %s17_s10, %s154_s13  ;;  %p160_p2 = scmp.lt.s32.totalorder %s154_s13, %s154_s13 }
   0x7   :  { %p161_p3 = por %p160_p2, %p159_p1 }
   0x9   :  { %p162_p4 = pnand %p161_p3, %p155_p0 }
   0xb   :  { %165 = shalt.err (!%p162_p4)
}
   0xc   :  { %19 = dma.hbm_to_vmem [thread:$0]  %s239_s0, 128, %s17_s10, [#allocation7]  }
   0xd   :  { %s174_s16 = scalar_lea.vmem %s27_s12, 128  ;;  %p179_p6 = scmp.lt.s32.totalorder %s27_s12, %s27_s12 }
   0xe   :  { %p175_p5 = scmp.ne.s32.totalorder %s27_s12, %s174_s16  ;;  %p180_p7 = scmp.lt.s32.totalorder %s174_s16, %s174_s16 }
  0x10   :  { %p181_p8 = por %p180_p7, %p179_p6 }
  0x12   :  { %p182_p9 = pnand %p181_p8, %p175_p5 }
  0x14   :  { %185 = shalt.err (!%p182_p9)
}
  0x15   :  { %29 = dma.hbm_to_vmem [thread:$0]  %s240_s1, 128, %s27_s12, [#allocation10]  }
  0x16   :  { %206 = dma.done.wait [#allocation7], 128  }
  0x17   :  { %207 = vsyncadd [#allocation7], 4294967168 }
  0x18   :  { %208 = dma.done.wait [#allocation10], 128  }
  0x19   :  { %209 = vsyncadd [#allocation10], 4294967168  ;;  %v47_v0 = vlaneseq  ;;  %v44_v2 = vld [vmem:[#allocation6] sm:$0xff]  ;;  %v45_v5 = vld [vmem:[#allocation9] sm:$0xff]  ;;  %vm102_vm1 = vcmask 7168   ;;  %s214_s0 = smov [#allocation11]  }
  0x1a   :  { %s121_s1 = sshll.u32 %s214_s0, 4  ;;  %s122_s1 = int_to_ptr.vmem [resolvable:$true] %s121_s1 }
  0x1b   :  { %v48_v1 = vand.u32 127, %v47_v0  ;;  %s186_s20 = scalar_lea.vmem %s122_s1, 128  ;;  %p191_p11 = scmp.lt.s32.totalorder %s122_s1, %s122_s1 }
  0x1c   :  { %p187_p10 = scmp.ne.s32.totalorder %s122_s1, %s186_s20  ;;  %p192_p12 = scmp.lt.s32.totalorder %s186_s20, %s186_s20 }
  0x1d   :  { %vm51_vm0 = vcmp.lt.s32.totalorder %v48_v1, 32 }
  0x1e   :  { %v52_v3 = vsel %vm51_vm0, %v44_v2, -1e+30  ;;  %v53_v6 = vsel %vm51_vm0, %v45_v5, 0.0  ;;  %p193_p13 = por %p192_p12, %p191_p11 }
  0x1f   :  { %v55_v4 = vmax.f32 %v52_v3, -1e+30  ;;  %98 = vadd.xlane.f32.xlu1 %v53_v6  ;;  %v67_v7 = vmax.f32 %v53_v6, 1.1754944e-38 }
  0x20   :  { %p194_p0 = pnand %p193_p13, %p187_p10 }
  0x21   :  { %82 = vmax.xlane.f32.xlu0 %v55_v4  ;;  %136 = vlog2.f32 %v67_v7  ;;  %v57_v12 = vsub.f32 -1e+30, %v55_v4  ;;  %v63_v13 = vsub.f32 %v52_v3, %v55_v4 }
  0x23   :  { %v58_v14 = vmul.f32 1.442695, %v57_v12  ;;  %v64_v15 = vmul.f32 1.442695, %v63_v13 }
  0x25   :  { %138 = vpow2.f32 %v58_v14 }
  0x26   :  { %140 = vpow2.f32 %v64_v15 }
  0x2e   :  { %v137_v8 = vpop.eup %136 }
  0x2f   :  { %v69_v9 = vmul.f32 0.6931472, %v137_v8 }
  0x31   :  { %v70_v10 = vsub.f32 %v69_v9, %v52_v3 }
  0x32   :  { %v139_v19 = vpop.eup %138 }
  0x33   :  { %v71_v11 = vmul.f32 %v70_v10, %v53_v6  ;;  %v60_v20 = vmul.f32 0.0, %v139_v19  ;;  %v141_v21 = vpop.eup %140 }
  0x35   :  { %95 = vadd.xlane.f32.xlu1 %v71_v11  ;;  %v66_v22 = vadd.f32 %v141_v21, %v60_v20 }
  0xa8   :  { %v99_v26 = vpop.xlane.xlu1 %98 }
  0xaa   :  { %v83_v16 = vpop.xlane.xlu0 %82 }
  0xab   :  { %v85_v17 = vsub.f32 %v55_v4, %v83_v16 }
  0xad   :  { %v86_v18 = vmul.f32 1.442695, %v85_v17 }
  0xaf   :  { %142 = vpow2.f32 %v86_v18 }
  0xbc   :  { %v143_v23 = vpop.eup %142 }
  0xbd   :  { %v88_v24 = vmul.f32 %v143_v23, %v66_v22 }
  0xbe   :  { %v96_v30 = vpop.xlane.xlu1 %95 }
  0xbf   :  { %89 = vadd.xlane.f32.xlu0 %v88_v24 }
 0x148   :  { %v90_v25 = vpop.xlane.xlu0 %89 }
 0x149   :  { %144 = vlog2.f32 %v90_v25 }
 0x156   :  { %v145_v27 = vpop.eup %144 }
 0x157   :  { %v92_v28 = vmul.f32 0.6931472, %v145_v27 }
 0x159   :  { %v93_v29 = vadd.f32 %v92_v28, %v83_v16 }
 0x15b   :  { %v100_v31 = vmul.f32 %v99_v26, %v93_v29 }
 0x15d   :  { %v101_v32 = vadd.f32 %v100_v31, %v96_v30 }
 0x15f   :  { %v103_v33 = vsel %vm102_vm1, %v101_v32, 0.0 }
 0x160   :  { %104 = vadd.xlane.f32.xlu0 %v103_v33 }
 0x1e9   :  { %v105_v34 = vpop.xlane.xlu0 %104 }
 0x1ea   :  { %v106_v35 = vrot.slane %v105_v34, 4 }
 0x1ec   :  { %v107_v36 = vadd.f32 %v106_v35, %v105_v34 }
 0x1ee   :  { %v108_v37 = vrot.slane %v107_v36, 2 }
 0x1f0   :  { %v109_v38 = vadd.f32 %v108_v37, %v107_v36 }
 0x1f2   :  { %v110_v39 = vrot.slane %v109_v38, 1 }
 0x1f4   :  { %v111_v40 = vadd.f32 %v110_v39, %v109_v38 }
 0x1f6   :  { %131 = vpush %v111_v40 }
 0x227   :  { %s132_s19 = spop %131 }
 0x228   :  { %v113_v41 = vstv %s132_s19 }
 0x229   :  { %114 = vst [vmem:[#allocation11] sm:$0xff] %v113_v41 }
 0x22a   :  { %197 = shalt.err (!%p194_p0)
}
 0x22b   :  { %124 = dma.vmem_to_hbm [thread:$0]  %s122_s1, 128, %s241_s2, [#allocation8]  }
 0x22c   :  { %210 = dma.done.wait [#allocation8], 128  }
 0x22d   :  { %211 = vsyncadd [#allocation8], 4294967168 }
 0x22e   :  { %128 = vsyncpa [#allocation7], 1 }
 0x22f   :  { %129 = vsyncpa [#allocation10], 1 }
 0x230   :  { %130 = vsyncpa [#allocation8], 1 }

</bundles_post_ra>
